<compile_context>
chip_gen: v7x
topology: tpu7x:2x2x1
jax: 0.10.0
libtpu: 0.0.40
codegen_flags: <defaults>
</compile_context>

<pallas_src>
import jax
import jax.numpy as jnp
from jax.experimental import pallas as pl
from jax.experimental.pallas import tpu as pltpu

R_DIM = 6          # GTR substitution-rate dimension
LANES = 128        # TPU lane width
KL_LANE = 7        # lane of the output row that carries the KL scalar
_HALF_LOG_2PI = 0.9189385332046727
_N_SHIFT = 5       # recurrence shifts before the Stirling series


# ---------------------------------------------------------------------------
# In-kernel special functions (Mosaic has no lgamma/digamma primitive).
# ---------------------------------------------------------------------------
def _softplus(x):
    # numerically stable softplus(x) = max(x,0) + log(1 + exp(-|x|))
    return jnp.maximum(x, 0.0) + jnp.log(1.0 + jnp.exp(-jnp.abs(x)))


def _lgamma_digamma(z):
    """Fused lgamma(z) and digamma(z) for z > 0.

    Shares the recurrence shift:
        lgamma(z) = lgamma(z+N) - sum_{k<N} log(z+k)
        psi(z)    = psi(z+N)    - sum_{k<N} 1/(z+k)
    followed by the 3-term Stirling series on x = z + N.
    """
    lg_shift = jnp.zeros_like(z)
    dg_shift = jnp.zeros_like(z)
    x = z
    for _ in range(_N_SHIFT):
        r = pl.reciprocal(x, approx=True)   # EUP vrcp
        r = r * (2.0 - x * r)               # Newton step (VPU): feeds psi directly
        lg_shift = lg_shift + jnp.log(x)
        dg_shift = dg_shift + r
        x = x + 1.0

    log_x = jnp.log(x)                      # shared by both tails
    xi = pl.reciprocal(x, approx=True)      # series-term scale only; approx OK
    xi2 = xi * xi

    lg = ((x - 0.5) * log_x - x + _HALF_LOG_2PI
          + xi * (1.0 / 12.0 + xi2 * (-1.0 / 360.0 + xi2 * (1.0 / 1260.0)))
          - lg_shift)
    dg = (log_x - 0.5 * xi
          - xi2 * (1.0 / 12.0 - xi2 * (1.0 / 120.0 - xi2 * (1.0 / 252.0)))
          - dg_shift)
    return lg, dg


# ---------------------------------------------------------------------------
# Pallas kernel: softplus(rates) + KL( Dirichlet(alpha) || Dirichlet(prior) ).
#   rates_ref : VMEM f32[1,128]  raw rates in lanes 0..5, 0 elsewhere
#   beta_ref  : VMEM f32[1,128]  prior beta in lanes 0..5, 1.0 elsewhere
#   c_ref     : SMEM f32[2]      [ sum_i lgamma(beta_i) - lgamma(sum beta),
#                                  sum beta ]
#   out_ref   : VMEM f32[1,128]  alpha in lanes 0..5, KL in lane KL_LANE,
#                                0 in every other lane.
# ---------------------------------------------------------------------------
def _rates_kl_kernel(rates_ref, beta_ref, c_ref, out_ref):
    col = jax.lax.broadcasted_iota(jnp.int32, (1, LANES), 1)
    in_mask = col < R_DIM                 # lanes carrying the real 6-dim vectors
    sum_lane = col == R_DIM               # lane 6 carries sum(alpha) for lgamma/digamma
    kl_lane = col == KL_LANE              # lane 7 carries the KL output

    raw = rates_ref[...]
    beta = beta_ref[...]

    # alpha = softplus(rates); 1.0 off-mask so the pad lanes stay benign for
    # the series; clamp guards underflow of softplus for very negative rates.
    alpha = jnp.where(in_mask, _softplus(raw), 1.0)
    alpha = jnp.maximum(alpha, 1e-6)

    # --- cross-lane reduction 1: sum(alpha) ------------------------------
    sum_alpha = jnp.sum(jnp.where(in_mask, alpha, 0.0), axis=-1, keepdims=True)

    # Pack alpha_0..5 (lanes 0..5) and sum_alpha (lane 6) into ONE vector so a
    # single fused lgamma+digamma evaluation covers every term.
    z = jnp.where(sum_lane, sum_alpha, alpha)
    lg, dg = _lgamma_digamma(z)

    # --- cross-lane reduction 2: one weighted sum for the whole KL -------
    #   KL = lgamma(sum a) - sum lgamma(a_i)
    #        + sum (a_i - b_i) psi(a_i) - (sum a - sum b) psi(sum a)
    #        + [prior-only constant]
    sum_beta = c_ref[1]
    in_f = in_mask.astype(jnp.float32)
    sum_f = sum_lane.astype(jnp.float32)
    coef_lg = sum_f - in_f
    coef_dg = jnp.where(in_mask, alpha - beta, 0.0) - sum_f * (sum_alpha - sum_beta)
    kl = jnp.sum(coef_lg * lg + coef_dg * dg, axis=-1, keepdims=True) + c_ref[0]

    # Single lane-dense output row: alpha | 0 | KL | zeros.
    out_ref[...] = jnp.where(in_mask, alpha, 0.0) + kl_lane.astype(jnp.float32) * kl


def _run_kernel(rates_row, beta_row, consts):
    vmem = pl.BlockSpec(memory_space=pltpu.MemorySpace.VMEM)
    smem = pl.BlockSpec(memory_space=pltpu.MemorySpace.SMEM)
    return pl.pallas_call(
        _rates_kl_kernel,
        out_shape=jax.ShapeDtypeStruct((1, LANES), jnp.float32),
        in_specs=[vmem, vmem, smem],
        out_specs=vmem,
    )(rates_row, beta_row, consts)


# ---------------------------------------------------------------------------
# Prior-dependent constants, computed once (outside the kernel / at init).
# ---------------------------------------------------------------------------
def make_prior_consts(prior):
    prior = prior.astype(jnp.float32)
    beta_row = jnp.ones((1, LANES), jnp.float32).at[0, :R_DIM].set(prior)
    sum_beta = jnp.sum(prior)
    prior_const = (jnp.sum(jax.scipy.special.gammaln(prior))
                   - jax.scipy.special.gammaln(sum_beta))
    consts = jnp.stack([prior_const, sum_beta]).astype(jnp.float32)
    return beta_row, consts


# ---------------------------------------------------------------------------
# Forward pass matching GTRSubRateIndDirEncoder.forward().
# ---------------------------------------------------------------------------
def gtr_sub_rate_encoder_forward(rates_param, beta_row, consts, sample_key,
                                 sample_size=1, min_clamp=False, max_clamp=False):
    rates_row = jnp.zeros((1, LANES), jnp.float32).at[0, :R_DIM].set(rates_param)
    out_row = _run_kernel(rates_row, beta_row, consts)

    rates = out_row[0, :R_DIM]            # softplus(rates) -> Dirichlet(q) concentration
    r_kl = out_row[0, KL_LANE:KL_LANE + 1]  # kl_divergence(...).flatten() -> (1,)

    # TODO(synk): Dirichlet.rsample (gamma rejection sampling) has no clean
    # Pallas equivalent; sampled with jax.random.dirichlet in host JAX.
    samples = jax.random.dirichlet(sample_key, rates, shape=(sample_size,))

    if not isinstance(min_clamp, bool):
        if isinstance(min_clamp, (float, int)):
            samples = jnp.maximum(samples, min_clamp)
    if not isinstance(max_clamp, bool):
        if isinstance(max_clamp, (float, int)):
            samples = jnp.minimum(samples, max_clamp)

    return samples, r_kl


if __name__ == "__main__":
    sample_size = 3

    key = jax.random.PRNGKey(0)
    k_rates, k_sample = jax.random.split(key)

    # nn.Parameter(zeros(6)) + nn.init.uniform_()  ->  U(0,1) 6-vector
    rates_param = jax.random.uniform(k_rates, (R_DIM,), jnp.float32)
    pi = jnp.ones((R_DIM,), jnp.float32)            # rates_prior_hp
    beta_row, consts = make_prior_consts(pi)        # hoisted prior-only terms

    samples, r_kl = gtr_sub_rate_encoder_forward(
        rates_param, beta_row, consts, k_sample,
        sample_size=sample_size, min_clamp=1e-6, max_clamp=False)

    samples = jax.block_until_ready(samples)
    r_kl = jax.block_until_ready(r_kl)

    assert samples.shape == (sample_size, R_DIM)
    assert r_kl.shape == (1,)
    assert bool(jnp.all(jnp.isfinite(samples))) and bool(jnp.all(jnp.isfinite(r_kl)))

    # Sanity check the kernel KL against a plain-JAX Dirichlet KL reference.
    alpha_ref = jax.nn.softplus(rates_param)
    sa = jnp.sum(alpha_ref)
    kl_ref = (jax.scipy.special.gammaln(sa)
              - jax.scipy.special.gammaln(jnp.sum(pi))
              + jnp.sum(jax.scipy.special.gammaln(pi)
                        - jax.scipy.special.gammaln(alpha_ref))
              + jnp.sum((alpha_ref - pi)
                        * (jax.scipy.special.digamma(alpha_ref)
                           - jax.scipy.special.digamma(sa))))
    assert abs(float(r_kl[0]) - float(kl_ref)) < 5e-3

    # Sanity check that the kernel's alpha lanes match softplus(rates).
    out_row = _run_kernel(
        jnp.zeros((1, LANES), jnp.float32).at[0, :R_DIM].set(rates_param),
        beta_row, consts)
    assert bool(jnp.allclose(out_row[0, :R_DIM], alpha_ref, atol=1e-5))

    print("KERNEL_OK")
</pallas_src>

<mosaic_0001>
module attributes {stable_mosaic.version = 11 : i64} {
  func.func @_rates_kl_kernel(%arg0: memref<1x128xf32, #tpu.memory_space<vmem>>, %arg1: memref<1x128xf32, #tpu.memory_space<vmem>>, %arg2: memref<2xf32, #tpu.memory_space<smem>>, %arg3: memref<1x128xf32, #tpu.memory_space<vmem>>) attributes {dimension_semantics = [], scalar_prefetch = 0 : i64, scratch_operands = 0 : i64, tpu.core_type = #tpu.core_type<tc>} {
    %0 = tpu.iota {dimensions = array<i32: 1>} : vector<1x128xi32>
    %c6_i32 = arith.constant 6 : i32
    %1 = vector.broadcast %c6_i32 : i32 to vector<1x128xi32>
    %2 = arith.cmpi slt, %0, %1 : vector<1x128xi32>
    %c6_i32_0 = arith.constant 6 : i32
    %3 = vector.broadcast %c6_i32_0 : i32 to vector<1x128xi32>
    %4 = arith.cmpi eq, %0, %3 : vector<1x128xi32>
    %c7_i32 = arith.constant 7 : i32
    %5 = vector.broadcast %c7_i32 : i32 to vector<1x128xi32>
    %6 = arith.cmpi eq, %0, %5 : vector<1x128xi32>
    %c0 = arith.constant 0 : index
    %c0_1 = arith.constant 0 : index
    %7 = vector.load %arg0[%c0, %c0_1] : memref<1x128xf32, #tpu.memory_space<vmem>>, vector<1x128xf32>
    %c0_2 = arith.constant 0 : index
    %c0_3 = arith.constant 0 : index
    %8 = vector.load %arg1[%c0_2, %c0_3] : memref<1x128xf32, #tpu.memory_space<vmem>>, vector<1x128xf32>
    %cst = arith.constant 0.000000e+00 : f32
    %9 = vector.broadcast %cst : f32 to vector<1x128xf32>
    %10 = arith.maximumf %7, %9 : vector<1x128xf32>
    %11 = math.absf %7 : vector<1x128xf32>
    %cst_4 = arith.constant 0.000000e+00 : f32
    %12 = vector.broadcast %cst_4 : f32 to vector<1x128xf32>
    %13 = arith.subf %12, %11 : vector<1x128xf32>
    %14 = math.exp %13 : vector<1x128xf32>
    %cst_5 = arith.constant 1.000000e+00 : f32
    %15 = vector.broadcast %cst_5 : f32 to vector<1x128xf32>
    %16 = arith.addf %15, %14 : vector<1x128xf32>
    %17 = math.log %16 : vector<1x128xf32>
    %18 = arith.addf %10, %17 : vector<1x128xf32>
    %cst_6 = arith.constant 1.000000e+00 : f32
    %19 = vector.broadcast %cst_6 : f32 to vector<1x128xf32>
    %20 = arith.select %2, %18, %19 : vector<1x128xi1>, vector<1x128xf32>
    %cst_7 = arith.constant 9.99999997E-7 : f32
    %21 = vector.broadcast %cst_7 : f32 to vector<1x128xf32>
    %22 = arith.maximumf %20, %21 : vector<1x128xf32>
    %cst_8 = arith.constant 0.000000e+00 : f32
    %23 = vector.broadcast %cst_8 : f32 to vector<1x128xf32>
    %24 = arith.select %2, %22, %23 : vector<1x128xi1>, vector<1x128xf32>
    %cst_9 = arith.constant dense<0.000000e+00> : vector<1xf32>
    %25 = vector.multi_reduction <add>, %24, %cst_9 [1] : vector<1x128xf32> to vector<1xf32>
    %26 = vector.shape_cast %25 : vector<1xf32> to vector<1x1xf32>
    %27 = vector.shape_cast %26 : vector<1x1xf32> to vector<1x1xf32>
    %28 = vector.broadcast %27 : vector<1x1xf32> to vector<1x128xf32>
    %29 = arith.select %4, %28, %22 : vector<1x128xi1>, vector<1x128xf32>
    %cst_10 = arith.constant 0.000000e+00 : f32
    %30 = vector.broadcast %cst_10 : f32 to vector<1x128xf32>
    %cst_11 = arith.constant 0.000000e+00 : f32
    %31 = vector.broadcast %cst_11 : f32 to vector<1x128xf32>
    %32 = tpu.reciprocal %29 {approx = true} : vector<1x128xf32> -> vector<1x128xf32>
    %33 = arith.mulf %29, %32 : vector<1x128xf32>
    %cst_12 = arith.constant 2.000000e+00 : f32
    %34 = vector.broadcast %cst_12 : f32 to vector<1x128xf32>
    %35 = arith.subf %34, %33 : vector<1x128xf32>
    %36 = arith.mulf %32, %35 : vector<1x128xf32>
    %37 = math.log %29 : vector<1x128xf32>
    %38 = arith.addf %30, %37 : vector<1x128xf32>
    %39 = arith.addf %31, %36 : vector<1x128xf32>
    %cst_13 = arith.constant 1.000000e+00 : f32
    %40 = vector.broadcast %cst_13 : f32 to vector<1x128xf32>
    %41 = arith.addf %29, %40 : vector<1x128xf32>
    %42 = tpu.reciprocal %41 {approx = true} : vector<1x128xf32> -> vector<1x128xf32>
    %43 = arith.mulf %41, %42 : vector<1x128xf32>
    %cst_14 = arith.constant 2.000000e+00 : f32
    %44 = vector.broadcast %cst_14 : f32 to vector<1x128xf32>
    %45 = arith.subf %44, %43 : vector<1x128xf32>
    %46 = arith.mulf %42, %45 : vector<1x128xf32>
    %47 = math.log %41 : vector<1x128xf32>
    %48 = arith.addf %38, %47 : vector<1x128xf32>
    %49 = arith.addf %39, %46 : vector<1x128xf32>
    %cst_15 = arith.constant 1.000000e+00 : f32
    %50 = vector.broadcast %cst_15 : f32 to vector<1x128xf32>
    %51 = arith.addf %41, %50 : vector<1x128xf32>
    %52 = tpu.reciprocal %51 {approx = true} : vector<1x128xf32> -> vector<1x128xf32>
    %53 = arith.mulf %51, %52 : vector<1x128xf32>
    %cst_16 = arith.constant 2.000000e+00 : f32
    %54 = vector.broadcast %cst_16 : f32 to vector<1x128xf32>
    %55 = arith.subf %54, %53 : vector<1x128xf32>
    %56 = arith.mulf %52, %55 : vector<1x128xf32>
    %57 = math.log %51 : vector<1x128xf32>
    %58 = arith.addf %48, %57 : vector<1x128xf32>
    %59 = arith.addf %49, %56 : vector<1x128xf32>
    %cst_17 = arith.constant 1.000000e+00 : f32
    %60 = vector.broadcast %cst_17 : f32 to vector<1x128xf32>
    %61 = arith.addf %51, %60 : vector<1x128xf32>
    %62 = tpu.reciprocal %61 {approx = true} : vector<1x128xf32> -> vector<1x128xf32>
    %63 = arith.mulf %61, %62 : vector<1x128xf32>
    %cst_18 = arith.constant 2.000000e+00 : f32
    %64 = vector.broadcast %cst_18 : f32 to vector<1x128xf32>
    %65 = arith.subf %64, %63 : vector<1x128xf32>
    %66 = arith.mulf %62, %65 : vector<1x128xf32>
    %67 = math.log %61 : vector<1x128xf32>
    %68 = arith.addf %58, %67 : vector<1x128xf32>
    %69 = arith.addf %59, %66 : vector<1x128xf32>
    %cst_19 = arith.constant 1.000000e+00 : f32
    %70 = vector.broadcast %cst_19 : f32 to vector<1x128xf32>
    %71 = arith.addf %61, %70 : vector<1x128xf32>
    %72 = tpu.reciprocal %71 {approx = true} : vector<1x128xf32> -> vector<1x128xf32>
    %73 = arith.mulf %71, %72 : vector<1x128xf32>
    %cst_20 = arith.constant 2.000000e+00 : f32
    %74 = vector.broadcast %cst_20 : f32 to vector<1x128xf32>
    %75 = arith.subf %74, %73 : vector<1x128xf32>
    %76 = arith.mulf %72, %75 : vector<1x128xf32>
    %77 = math.log %71 : vector<1x128xf32>
    %78 = arith.addf %68, %77 : vector<1x128xf32>
    %79 = arith.addf %69, %76 : vector<1x128xf32>
    %cst_21 = arith.constant 1.000000e+00 : f32
    %80 = vector.broadcast %cst_21 : f32 to vector<1x128xf32>
    %81 = arith.addf %71, %80 : vector<1x128xf32>
    %82 = math.log %81 : vector<1x128xf32>
    %83 = tpu.reciprocal %81 {approx = true} : vector<1x128xf32> -> vector<1x128xf32>
    %84 = arith.mulf %83, %83 : vector<1x128xf32>
    %cst_22 = arith.constant 5.000000e-01 : f32
    %85 = vector.broadcast %cst_22 : f32 to vector<1x128xf32>
    %86 = arith.subf %81, %85 : vector<1x128xf32>
    %87 = arith.mulf %86, %82 : vector<1x128xf32>
    %88 = arith.subf %87, %81 : vector<1x128xf32>
    %cst_23 = arith.constant 0.918938517 : f32
    %89 = vector.broadcast %cst_23 : f32 to vector<1x128xf32>
    %90 = arith.addf %88, %89 : vector<1x128xf32>
    %cst_24 = arith.constant 7.93650805E-4 : f32
    %91 = vector.broadcast %cst_24 : f32 to vector<1x128xf32>
    %92 = arith.mulf %84, %91 : vector<1x128xf32>
    %cst_25 = arith.constant -0.00277777785 : f32
    %93 = vector.broadcast %cst_25 : f32 to vector<1x128xf32>
    %94 = arith.addf %93, %92 : vector<1x128xf32>
    %95 = arith.mulf %84, %94 : vector<1x128xf32>
    %cst_26 = arith.constant 0.0833333358 : f32
    %96 = vector.broadcast %cst_26 : f32 to vector<1x128xf32>
    %97 = arith.addf %96, %95 : vector<1x128xf32>
    %98 = arith.mulf %83, %97 : vector<1x128xf32>
    %99 = arith.addf %90, %98 : vector<1x128xf32>
    %100 = arith.subf %99, %78 : vector<1x128xf32>
    %cst_27 = arith.constant 5.000000e-01 : f32
    %101 = vector.broadcast %cst_27 : f32 to vector<1x128xf32>
    %102 = arith.mulf %101, %83 : vector<1x128xf32>
    %103 = arith.subf %82, %102 : vector<1x128xf32>
    %cst_28 = arith.constant 0.0039682542 : f32
    %104 = vector.broadcast %cst_28 : f32 to vector<1x128xf32>
    %105 = arith.mulf %84, %104 : vector<1x128xf32>
    %cst_29 = arith.constant 0.00833333377 : f32
    %106 = vector.broadcast %cst_29 : f32 to vector<1x128xf32>
    %107 = arith.subf %106, %105 : vector<1x128xf32>
    %108 = arith.mulf %84, %107 : vector<1x128xf32>
    %cst_30 = arith.constant 0.0833333358 : f32
    %109 = vector.broadcast %cst_30 : f32 to vector<1x128xf32>
    %110 = arith.subf %109, %108 : vector<1x128xf32>
    %111 = arith.mulf %84, %110 : vector<1x128xf32>
    %112 = arith.subf %103, %111 : vector<1x128xf32>
    %113 = arith.subf %112, %79 : vector<1x128xf32>
    %c1 = arith.constant 1 : index
    %114 = memref.load %arg2[%c1] : memref<2xf32, #tpu.memory_space<smem>>
    %115 = arith.extui %2 : vector<1x128xi1> to vector<1x128xi32>
    %116 = arith.sitofp %115 : vector<1x128xi32> to vector<1x128xf32>
    %117 = arith.extui %4 : vector<1x128xi1> to vector<1x128xi32>
    %118 = arith.sitofp %117 : vector<1x128xi32> to vector<1x128xf32>
    %119 = arith.subf %118, %116 : vector<1x128xf32>
    %120 = arith.subf %22, %8 : vector<1x128xf32>
    %cst_31 = arith.constant 0.000000e+00 : f32
    %121 = vector.broadcast %cst_31 : f32 to vector<1x128xf32>
    %122 = arith.select %2, %120, %121 : vector<1x128xi1>, vector<1x128xf32>
    %123 = vector.broadcast %114 : f32 to vector<1x1xf32>
    %124 = arith.subf %26, %123 : vector<1x1xf32>
    %125 = vector.broadcast %124 : vector<1x1xf32> to vector<1x128xf32>
    %126 = arith.mulf %118, %125 : vector<1x128xf32>
    %127 = arith.subf %122, %126 : vector<1x128xf32>
    %128 = arith.mulf %119, %100 : vector<1x128xf32>
    %129 = arith.mulf %127, %113 : vector<1x128xf32>
    %130 = arith.addf %128, %129 : vector<1x128xf32>
    %cst_32 = arith.constant dense<0.000000e+00> : vector<1xf32>
    %131 = vector.multi_reduction <add>, %130, %cst_32 [1] : vector<1x128xf32> to vector<1xf32>
    %132 = vector.shape_cast %131 : vector<1xf32> to vector<1x1xf32>
    %c0_33 = arith.constant 0 : index
    %133 = memref.load %arg2[%c0_33] : memref<2xf32, #tpu.memory_space<smem>>
    %134 = vector.broadcast %133 : f32 to vector<1x1xf32>
    %135 = arith.addf %132, %134 : vector<1x1xf32>
    %cst_34 = arith.constant 0.000000e+00 : f32
    %136 = vector.broadcast %cst_34 : f32 to vector<1x128xf32>
    %137 = arith.select %2, %22, %136 : vector<1x128xi1>, vector<1x128xf32>
    %138 = arith.extui %6 : vector<1x128xi1> to vector<1x128xi32>
    %139 = arith.sitofp %138 : vector<1x128xi32> to vector<1x128xf32>
    %140 = vector.broadcast %135 : vector<1x1xf32> to vector<1x128xf32>
    %141 = arith.mulf %139, %140 : vector<1x128xf32>
    %142 = arith.addf %137, %141 : vector<1x128xf32>
    %c0_35 = arith.constant 0 : index
    %c0_36 = arith.constant 0 : index
    %143 = vector.load %arg3[%c0_35, %c0_36] : memref<1x128xf32, #tpu.memory_space<vmem>>, vector<1x128xf32>
    tpu.vector_store %arg3[%c0_35, %c0_36], %142 {strides = array<i32>} : memref<1x128xf32, #tpu.memory_space<vmem>>, vector<1x128xf32>,
    return
  }
}

</mosaic_0001>

<bundles_post_ra>
// kernel: tpu_custom_call.1
= control target key start
LH: loop header
LB: loop body
LE: loop exit
PB: predicated region body
PF: predicated region fallthrough
CT: control target
= control target key end

     0   :  { %8 = vsyncpa [#allocation3], 0  ;;  %s369_s0 = inlined_call_operand.hbm [shape: f32[1,128], index: 0, kind: input, shape index: {}]   ;;  %s370_s1 = inlined_call_operand.vmem [shape: f32[1,128], index: 1, kind: input, shape index: {}]   ;;  %s371_s2 = inlined_call_operand.vmem [shape: f32[2], index: 2, kind: input, shape index: {}]   ;;  %s372_s3 = inlined_call_operand.hbm [shape: f32[1,128], index: 3, kind: output, shape index: {}]  }
   0x1   :  { %9 = vsyncpa [#allocation5], 0 }
   0x2   :  { %10 = vsyncpa [#allocation4], 0  ;;  %s29_s14 = sshll.u32 %s371_s2, 4  ;;  %s274_s15 = smov [#allocation2]   ;;  %s30_s14 = int_to_ptr.vmem [resolvable:$true] %s29_s14 }
   0x3   :  { %s17_s16 = sshll.u32 %s274_s15, 4  ;;  %s212_s19 = scalar_lea.hbm %s369_s0, 16  ;;  %s18_s16 = int_to_ptr.vmem [resolvable:$true] %s17_s16 }
   0x4   :  { %p213_p0 = scmp.ne.s32.totalorder %s369_s0, %s212_s19  ;;  %p216_p1 = scmp.lt.u32.totalorder %s212_s19, %s369_s0 }
   0x6   :  { %p218_p2 = pnand %p216_p1, %p213_p0 }
   0x8   :  { %221 = shalt.err (!%p218_p2)
}
   0x9   :  { %s222_s24 = scalar_lea.vmem %s18_s16, 16  ;;  %s226_s2 = scalar_lea.vmem %s18_s16, 32 }
   0xa   :  { %p223_p3 = scmp.ne.s32.totalorder %s18_s16, %s222_s24  ;;  %p227_p4 = scmp.lt.s32.totalorder %s18_s16, %s18_s16 }
   0xb   :  { %p228_p5 = scmp.lt.s32.totalorder %s226_s2, %s222_s24 }
   0xd   :  { %p229_p6 = por %p228_p5, %p227_p4 }
   0xf   :  { %p230_p7 = pnand %p229_p6, %p223_p3 }
  0x11   :  { %233 = shalt.err (!%p230_p7)
}
  0x12   :  { %20 = dma.hbm_to_vmem [thread:$0]  %s369_s0, 16, %s18_s16, [#allocation3]  }
  0x13   :  { %s234_s27 = scalar_lea.vmem %s30_s14, 16  ;;  %p239_p9 = scmp.lt.s32.totalorder %s30_s14, %s30_s14 }
  0x14   :  { %p235_p8 = scmp.ne.s32.totalorder %s30_s14, %s234_s27  ;;  %p240_p10 = scmp.lt.s32.totalorder %s234_s27, %s234_s27 }
  0x16   :  { %p241_p11 = por %p240_p10, %p239_p9 }
  0x18   :  { %p242_p12 = pnand %p241_p11, %p235_p8 }
  0x1a   :  { %245 = shalt.err (!%p242_p12)
}
  0x1b   :  { %s275_s28 = smov [#allocation6]  }
  0x1c   :  { %32 = dma.vmem_to_smem %s30_s14, 16, %s275_s28, [#allocation5]  }
  0x1d   :  { %268 = dma.done.wait [#allocation3], 16  }
  0x1e   :  { %269 = vsyncadd [#allocation3], 4294967280 }
  0x1f   :  { %270 = dma.done.wait [#allocation5], 16  }
  0x20   :  { %271 = vsyncadd [#allocation5], 4294967280 }
  0x21   :  { %39 = sfence }
  0x22   :  { %v45_v0 = vld [vmem:[#allocation2] sm:$0x1]  ;;  %v40_v6 = vlaneseq  ;;  %vm59_vm1 = vcmask 1040384   ;;  %s338_s0 = sld [smem:[#allocation6 + $0x1]]  ;;  %s277_s4 = smov [#allocation7]  }
  0x23   :  { %v48_v1 = vand.u32 2147483647, %v45_v0  ;;  %v47_v8 = vmax.f32 %v45_v0, 0.0  ;;  %v46_v58 = vld [vmem:[%s370_s1] sm:$0x1]  ;;  %s151_s1 = sld [smem:[#allocation6]] }
  0x24   :  { %v313_v7 = vand.u32 127, %v40_v6  ;;  %s165_s5 = sshll.u32 %s277_s4, 4  ;;  %s166_s5 = int_to_ptr.vmem [resolvable:$true] %s165_s5 }
  0x25   :  { %v49_v2 = vsub.f32 0.0, %v48_v1  ;;  %s246_s6 = scalar_lea.vmem %s166_s5, 16  ;;  %s250_s7 = scalar_lea.vmem %s166_s5, 32 }
  0x26   :  { %vm42_vm0 = vcmp.lt.s32.totalorder %v313_v7, 6  ;;  %vm43_vm2 = vcmp.eq.s32.totalorder %v313_v7, 6  ;;  %vm44_vm3 = vcmp.eq.s32.totalorder %v313_v7, 7  ;;  %p247_p13 = scmp.ne.s32.totalorder %s166_s5, %s246_s6  ;;  %p251_p0 = scmp.lt.s32.totalorder %s166_s5, %s166_s5 }
  0x27   :  { %v50_v3 = vmul.f32 1.442695, %v49_v2  ;;  %p252_p1 = scmp.lt.s32.totalorder %s250_s7, %s246_s6 }
  0x28   :  { %v141_v54 = vstv %s338_s0 }
  0x29   :  { %184 = vpow2.f32 %v50_v3  ;;  %v276_v3 = vmov 0.0   ;;  %p253_p2 = por %p252_p1, %p251_p0 }
  0x2b   :  { %p254_p3 = pnand %p253_p2, %p247_p13 }
  0x33   :  { %v185_v4 = vpop.eup %184 }
  0x34   :  { %v52_v5 = vadd.f32 1.0, %v185_v4  ;;  %v178_v4 = vsel %vm43_vm2, 1.0, %v276_v3 }
  0x36   :  { %186 = vlog2.f32 %v52_v5 }
  0x40   :  { %v187_v9 = vpop.eup %186 }
  0x41   :  { %v54_v10 = vmul.f32 0.6931472, %v187_v9 }
  0x43   :  { %v55_v11 = vadd.f32 %v54_v10, %v47_v8 }
  0x45   :  { %v56_v12 = vsel %vm42_vm0, %v55_v11, 1.0  ;;  %v177_v11 = vsel %vm42_vm0, 1.0, %v276_v3 }
  0x46   :  { %v318_v13 = vmax.f32 %v56_v12, 1e-06 }
  0x48   :  { %v323_v14 = vsel %vm42_vm0, %v318_v13, 0.0  ;;  %v139_v12 = vsub.f32 %v318_v13, %v46_v58 }
  0x49   :  { %v60_v15 = vsel %vm59_vm1, %v323_v14, 0.0 }
  0x4a   :  { %61 = vadd.xlane.f32.xlu0 %v60_v15 }
  0xd7   :  { %v328_v16 = vpop.xlane.xlu0 %61 }
  0xd8   :  { %v63_v17 = vsel %vm43_vm2, %v328_v16, %v318_v13  ;;  %v142_v5 = vsub.f32 %v328_v16, %v141_v54 }
  0xd9   :  { %188 = vrcp.f32 %v63_v17  ;;  %v72_v18 = vadd.f32 1.0, %v63_v17 }
  0xdb   :  { %190 = vrcp.f32 %v72_v18  ;;  %v81_v19 = vadd.f32 1.0, %v72_v18 }
  0xdc   :  { %192 = vlog2.f32 %v72_v18 }
  0xdd   :  { %194 = vrcp.f32 %v81_v19  ;;  %v90_v20 = vadd.f32 1.0, %v81_v19 }
  0xde   :  { %196 = vlog2.f32 %v63_v17 }
  0xdf   :  { %198 = vrcp.f32 %v90_v20  ;;  %v99_v21 = vadd.f32 1.0, %v90_v20 }
  0xe0   :  { %200 = vlog2.f32 %v81_v19 }
  0xe1   :  { %v334_v22 = vadd.f32 1.0, %v99_v21  ;;  %202 = vrcp.f32 %v99_v21 }
  0xe3   :  { %v189_v23 = vpop.eup %188  ;;  %204 = vlog2.f32 %v334_v22  ;;  %v175_v53 = vadd.f32 -0.5, %v334_v22 }
  0xe4   :  { %v65_v24 = vmul.f32 %v189_v23, %v63_v17  ;;  %206 = vrcp.f32 %v334_v22 }
  0xe5   :  { %v191_v25 = vpop.eup %190  ;;  %208 = vlog2.f32 %v90_v20 }
  0xe6   :  { %v193_v26 = vpop.eup %192  ;;  %v74_v27 = vmul.f32 %v191_v25, %v72_v18  ;;  %v66_v30 = vsub.f32 2.0, %v65_v24  ;;  %210 = vlog2.f32 %v99_v21 }
  0xe7   :  { %v195_v28 = vpop.eup %194  ;;  %v78_v34 = vmul.f32 0.6931472, %v193_v26 }
  0xe8   :  { %v197_v29 = vpop.eup %196  ;;  %v75_v31 = vsub.f32 2.0, %v74_v27  ;;  %v83_v32 = vmul.f32 %v195_v28, %v81_v19  ;;  %v67_v41 = vmul.f32 %v189_v23, %v66_v30  ;;  %v143_v23 = vmul.f32 %v178_v4, %v142_v5 }
  0xe9   :  { %v199_v33 = vpop.eup %198  ;;  %v69_v38 = vmul.f32 0.6931472, %v197_v29  ;;  %v140_v27 = vsel %vm42_vm0, %v139_v12, 0.0 }
  0xea   :  { %v76_v35 = vmul.f32 %v191_v25, %v75_v31  ;;  %v84_v36 = vsub.f32 2.0, %v83_v32  ;;  %v201_v37 = vpop.eup %200  ;;  %v92_v39 = vmul.f32 %v199_v33, %v90_v20  ;;  %v144_v13 = vsub.f32 %v140_v27, %v143_v23 }
  0xeb   :  { %v203_v40 = vpop.eup %202  ;;  %v79_v43 = vadd.f32 %v78_v34, %v69_v38  ;;  %v87_v47 = vmul.f32 0.6931472, %v201_v37  ;;  %v152_v38 = vstv %s151_s1 }
  0xec   :  { %v80_v45 = vadd.f32 %v76_v35, %v67_v41  ;;  %v85_v46 = vmul.f32 %v195_v28, %v84_v36  ;;  %v93_v50 = vsub.f32 2.0, %v92_v39  ;;  %v101_v51 = vmul.f32 %v203_v40, %v99_v21 }
  0xed   :  { %v205_v42 = vpop.eup %204  ;;  %v88_v60 = vadd.f32 %v87_v47, %v79_v43  ;;  %v179_v39 = vsel %vm44_vm3, 1.0, %v276_v3 }
  0xee   :  { %v207_v44 = vpop.eup %206  ;;  %v110_v48 = vmul.f32 0.6931472, %v205_v42  ;;  %v89_v59 = vadd.f32 %v85_v46, %v80_v45  ;;  %v94_v63 = vmul.f32 %v199_v33, %v93_v50  ;;  %v102_v0 = vsub.f32 2.0, %v101_v51 }
  0xef   :  { %v209_v49 = vpop.eup %208  ;;  %v112_v52 = vmul.f32 %v207_v44, %v207_v44  ;;  %v124_v9 = vmul.f32 0.5, %v207_v44 }
  0xf0   :  { %v114_v55 = vmul.f32 %v175_v53, %v110_v48  ;;  %v96_v61 = vmul.f32 0.6931472, %v209_v49  ;;  %v211_v62 = vpop.eup %210  ;;  %v98_v18 = vadd.f32 %v94_v63, %v89_v59  ;;  %v103_v19 = vmul.f32 %v203_v40, %v102_v0 }
  0xf1   :  { %v117_v56 = vmul.f32 0.0007936508, %v112_v52  ;;  %v126_v57 = vmul.f32 0.003968254, %v112_v52  ;;  %v105_v17 = vmul.f32 0.6931472, %v211_v62  ;;  %v125_v16 = vsub.f32 %v110_v48, %v124_v9 }
  0xf2   :  { %v115_v6 = vsub.f32 %v114_v55, %v334_v22  ;;  %v97_v15 = vadd.f32 %v96_v61, %v88_v60  ;;  %v138_v22 = vsub.f32 %v178_v4, %v177_v11  ;;  %v107_v29 = vadd.f32 %v103_v19, %v98_v18 }
  0xf3   :  { %v118_v1 = vadd.f32 -0.0027777778, %v117_v56  ;;  %v127_v2 = vsub.f32 0.008333334, %v126_v57 }
  0xf4   :  { %v116_v24 = vadd.f32 0.9189385, %v115_v6  ;;  %v106_v28 = vadd.f32 %v105_v17, %v97_v15 }
  0xf5   :  { %v119_v8 = vmul.f32 %v118_v1, %v112_v52  ;;  %v128_v10 = vmul.f32 %v127_v2, %v112_v52 }
  0xf7   :  { %v120_v20 = vadd.f32 0.083333336, %v119_v8  ;;  %v129_v21 = vsub.f32 0.083333336, %v128_v10 }
  0xf9   :  { %v121_v25 = vmul.f32 %v207_v44, %v120_v20  ;;  %v130_v26 = vmul.f32 %v129_v21, %v112_v52 }
  0xfb   :  { %v122_v30 = vadd.f32 %v121_v25, %v116_v24  ;;  %v131_v31 = vsub.f32 %v125_v16, %v130_v26 }
  0xfd   :  { %v123_v32 = vsub.f32 %v122_v30, %v106_v28  ;;  %v132_v33 = vsub.f32 %v131_v31, %v107_v29 }
  0xff   :  { %v145_v34 = vmul.f32 %v138_v22, %v123_v32  ;;  %v146_v35 = vmul.f32 %v144_v13, %v132_v33 }
 0x101   :  { %v147_v36 = vadd.f32 %v146_v35, %v145_v34 }
 0x103   :  { %v148_v37 = vsel %vm59_vm1, %v147_v36, 0.0 }
 0x104   :  { %149 = vadd.xlane.f32.xlu0 %v148_v37 }
 0x191   :  { %v150_v40 = vpop.xlane.xlu0 %149 }
 0x192   :  { %v153_v41 = vadd.f32 %v152_v38, %v150_v40 }
 0x194   :  { %v156_v42 = vmul.f32 %v179_v39, %v153_v41 }
 0x196   :  { %v157_v43 = vadd.f32 %v156_v42, %v323_v14 }
 0x198   :  { %158 = vst [vmem:[#allocation7] sm:$0x1] %v157_v43 }
 0x199   :  { %257 = shalt.err (!%p254_p3)
}
 0x19a   :  { %s258_s10 = scalar_lea.hbm %s372_s3, 16 }
 0x19b   :  { %p259_p4 = scmp.ne.s32.totalorder %s372_s3, %s258_s10  ;;  %p262_p5 = scmp.lt.u32.totalorder %s258_s10, %s372_s3 }
 0x19d   :  { %p264_p6 = pnand %p262_p5, %p259_p4 }
 0x19f   :  { %267 = shalt.err (!%p264_p6)
}
 0x1a0   :  { %168 = dma.vmem_to_hbm [thread:$0]  %s166_s5, 16, %s372_s3, [#allocation4]  }
 0x1a1   :  { %272 = dma.done.wait [#allocation4], 16  }
 0x1a2   :  { %273 = vsyncadd [#allocation4], 4294967280 }
 0x1a3   :  { %172 = vsyncpa [#allocation3], 1 }
 0x1a4   :  { %173 = vsyncpa [#allocation4], 1 }
 0x1a5   :  { %174 = vsyncpa [#allocation5], 1 }

</bundles_post_ra>
